<compile_context>
chip_gen: v7x
topology: tpu7x:2x2x1
jax: 0.10.0
libtpu: 0.0.40
codegen_flags: <defaults>
</compile_context>

<pallas_src>
import functools

import jax
import jax.numpy as jnp
from jax.experimental import pallas as pl
from jax.experimental.pallas import tpu as pltpu

_ROW_TILE = 128   # row-tile granularity (keeps sublane/lane tiling trivial)


def _round_up(x, m):
    return (x + m - 1) // m * m


def _focal_loss_kernel(logits_ref, target_ref, out_ref, acc_ref, *, alpha, gamma):
    """Accumulates sum_i focal_i for this split; writes it once at the end."""

    @pl.when(pl.program_id(1) == 0)
    def _init():
        acc_ref[...] = jnp.zeros_like(acc_ref)

    x = logits_ref[...].astype(jnp.float32)        # (tile_rows, C)
    t = target_ref[...]                            # (tile_rows, 1) int32

    # Numerically stable log-sum-exp over classes (lane axis).
    m = jnp.max(x, axis=-1, keepdims=True)
    lse = m + jnp.log(jnp.sum(jnp.exp(x - m), axis=-1, keepdims=True))

    # Gather the target-class logit via a one-hot compare (no dynamic gather).
    cls = jax.lax.broadcasted_iota(jnp.int32, x.shape, 1)
    picked = jnp.sum(jnp.where(cls == t, x, 0.0), axis=-1, keepdims=True)

    ce = jnp.maximum(lse - picked, 0.0)            # clamp fp-noise negatives
    p_t = jnp.exp(-ce)
    base = jnp.maximum(1.0 - p_t, 0.0)             # keep pow base >= 0

    g = float(gamma)
    if g.is_integer() and 0.0 <= g <= 8.0:         # integer gamma: VPU muls
        mod = jnp.ones_like(base)
        for _ in range(int(g)):
            mod = mod * base
    else:                                          # generic gamma: pow path
        mod = base ** jnp.float32(g)

    alpha_t = jnp.where(t == 1, jnp.float32(alpha), jnp.float32(1.0 - alpha))
    valid = (t >= 0).astype(jnp.float32)           # padded rows carry target -1
    focal = mod * ce * alpha_t * valid             # (tile_rows, 1)

    acc_ref[...] += jnp.sum(focal, axis=0, keepdims=True)    # (1, 1)

    @pl.when(pl.program_id(1) == pl.num_programs(1) - 1)
    def _finalize():
        out_ref[...] = acc_ref[...]


def focal_loss(logits, target, *, alpha=0.25, gamma=2.0):
    """logits: (N, C) float (any float dtype); target: (N,) int class ids.

    Returns the scalar f32 focal loss with 'mean' reduction.
    """
    n, c = logits.shape

    # Row tile: multiple of 128, sized so one logits tile stays <= ~4 MiB so
    # the double-buffered pipeline fits every chip's scoped VMEM with headroom.
    row_bytes = c * logits.dtype.itemsize
    cap_rows = max(_ROW_TILE,
                   ((4 << 20) // max(row_bytes, 1)) // _ROW_TILE * _ROW_TILE)
    tile_rows = int(min(1024, cap_rows, _round_up(n, _ROW_TILE)))
    # TODO(synk): extremely large class counts (128*C*4 > ~4 MiB) would also
    # need tiling over C with an online log-sum-exp; not needed for this module.

    n_tiles = pl.cdiv(n, tile_rows)
    num_splits = 2 if n_tiles >= 2 else 1          # megacore split on v7x
    tiles_per_split = pl.cdiv(n_tiles, num_splits)
    n_pad = num_splits * tiles_per_split * tile_rows

    target_i = target.astype(jnp.int32).reshape(n, 1)
    if n_pad != n:
        logits_p = jnp.pad(logits, ((0, n_pad - n), (0, 0)))
        target_i = jnp.pad(target_i, ((0, n_pad - n), (0, 0)),
                           constant_values=-1)
    else:
        logits_p = logits

    kernel = functools.partial(
        _focal_loss_kernel, alpha=float(alpha), gamma=float(gamma))

    partial_sums = pl.pallas_call(
        kernel,
        out_shape=jax.ShapeDtypeStruct((num_splits, 1, 1), jnp.float32),
        grid_spec=pltpu.PrefetchScalarGridSpec(
            num_scalar_prefetch=0,
            grid=(num_splits, tiles_per_split),
            in_specs=[
                pl.BlockSpec((tile_rows, c),
                             lambda s, j: (s * tiles_per_split + j, 0)),
                pl.BlockSpec((tile_rows, 1),
                             lambda s, j: (s * tiles_per_split + j, 0)),
            ],
            out_specs=pl.BlockSpec((None, 1, 1), lambda s, j: (s, 0, 0)),
            scratch_shapes=[pltpu.VMEM((1, 1), jnp.float32)],
        ),
        compiler_params=pltpu.CompilerParams(
            dimension_semantics=("parallel", "arbitrary"),
            vmem_limit_bytes=32 * 1024 * 1024,
        ),
    )(logits_p, target_i)

    return jnp.sum(partial_sums) / jnp.float32(n)


def _focal_loss_ref(logits, target, *, alpha=0.25, gamma=2.0):
    """Pure-JAX reference mirroring the PyTorch module (reduction='mean')."""
    logits = logits.astype(jnp.float32)
    lse = jax.nn.logsumexp(logits, axis=-1)
    picked = jnp.take_along_axis(
        logits, target[:, None].astype(jnp.int32), axis=-1)[:, 0]
    ce = lse - picked
    p_t = jnp.exp(-ce)
    focal = (1.0 - p_t) ** gamma * ce
    alpha_t = jnp.where(target == 1, alpha, 1.0 - alpha).astype(jnp.float32)
    return jnp.mean(focal * alpha_t)


if __name__ == "__main__":
    key = jax.random.PRNGKey(0)
    k1, k2, k3, k4 = jax.random.split(key, 4)

    # Small case matching the module's typical use (batch of logits + labels).
    N, C = 8, 4
    logits = jax.random.normal(k1, (N, C), dtype=jnp.float32)
    target = jax.random.randint(k2, (N,), 0, C, dtype=jnp.int32)
    out = jax.block_until_ready(focal_loss(logits, target, alpha=0.25, gamma=2.0))
    ref = _focal_loss_ref(logits, target, alpha=0.25, gamma=2.0)
    assert jnp.allclose(out, ref, rtol=1e-5, atol=1e-6), (out, ref)

    # Multi-tile / ragged padding + native bf16 input path.
    N2, C2 = 300, 8
    logits2 = jax.random.normal(k3, (N2, C2), dtype=jnp.bfloat16)
    target2 = jax.random.randint(k4, (N2,), 0, C2, dtype=jnp.int32)
    out2 = jax.block_until_ready(focal_loss(logits2, target2, alpha=0.25, gamma=2.0))
    ref2 = _focal_loss_ref(logits2, target2, alpha=0.25, gamma=2.0)
    assert jnp.allclose(out2, ref2, rtol=1e-4, atol=1e-5), (out2, ref2)

    print("KERNEL_OK")
</pallas_src>

<mosaic_0001>
module attributes {stable_mosaic.version = 11 : i64} {
  func.func @_focal_loss_kernel(%arg0: i32, %arg1: i32, %arg2: memref<128x4xf32, #tpu.memory_space<vmem>>, %arg3: memref<128x1xi32, #tpu.memory_space<vmem>>, %arg4: memref<1x1x1xf32, #tpu.memory_space<vmem>>, %arg5: memref<1x1xf32, #tpu.memory_space<vmem>>) attributes {dimension_semantics = [#tpu.dimension_semantics<parallel>, #tpu.dimension_semantics<arbitrary>], iteration_bounds = array<i64: 1, 1>, scalar_prefetch = 0 : i64, scratch_operands = 1 : i64, tpu.core_type = #tpu.core_type<tc>, window_params = [{transform_indices = @transform_0, window_bounds = array<i64: 128, 4>}, {transform_indices = @transform_1, window_bounds = array<i64: 128, 1>}, {transform_indices = @transform_2, window_bounds = array<i64: 1, 1, 1>}]} {
    %c0_i32 = arith.constant 0 : i32
    %0 = arith.cmpi eq, %arg1, %c0_i32 : i32
    %1 = arith.extui %0 : i1 to i32
    %c0_i32_0 = arith.constant 0 : i32
    %2 = arith.cmpi ne, %1, %c0_i32_0 : i32
    scf.if %2 {
      %cst_22 = arith.constant 0.000000e+00 : f32
      %54 = vector.broadcast %cst_22 : f32 to vector<1x1xf32>
      %c0_23 = arith.constant 0 : index
      %c0_24 = arith.constant 0 : index
      %55 = vector.load %arg5[%c0_23, %c0_24] : memref<1x1xf32, #tpu.memory_space<vmem>>, vector<1x1xf32>
      tpu.vector_store %arg5[%c0_23, %c0_24], %54 {strides = array<i32>} : memref<1x1xf32, #tpu.memory_space<vmem>>, vector<1x1xf32>,
    } else {
    }
    %c0 = arith.constant 0 : index
    %c0_1 = arith.constant 0 : index
    %3 = vector.load %arg2[%c0, %c0_1] : memref<128x4xf32, #tpu.memory_space<vmem>>, vector<128x4xf32>
    %c0_2 = arith.constant 0 : index
    %c0_3 = arith.constant 0 : index
    %4 = vector.load %arg3[%c0_2, %c0_3] : memref<128x1xi32, #tpu.memory_space<vmem>>, vector<128x1xi32>
    %cst = arith.constant dense<0xFF800000> : vector<128xf32>
    %5 = vector.multi_reduction <maximumf>, %3, %cst [1] : vector<128x4xf32> to vector<128xf32>
    %6 = vector.shape_cast %5 : vector<128xf32> to vector<128x1xf32>
    %7 = vector.broadcast %6 : vector<128x1xf32> to vector<128x4xf32>
    %8 = arith.subf %3, %7 : vector<128x4xf32>
    %9 = math.exp %8 : vector<128x4xf32>
    %cst_4 = arith.constant dense<0.000000e+00> : vector<128xf32>
    %10 = vector.multi_reduction <add>, %9, %cst_4 [1] : vector<128x4xf32> to vector<128xf32>
    %11 = vector.shape_cast %10 : vector<128xf32> to vector<128x1xf32>
    %12 = math.log %11 : vector<128x1xf32>
    %13 = arith.addf %6, %12 : vector<128x1xf32>
    %14 = tpu.iota {dimensions = array<i32: 1>} : vector<128x4xi32>
    %15 = vector.broadcast %4 : vector<128x1xi32> to vector<128x4xi32>
    %16 = arith.cmpi eq, %14, %15 : vector<128x4xi32>
    %cst_5 = arith.constant 0.000000e+00 : f32
    %17 = vector.broadcast %cst_5 : f32 to vector<128x4xf32>
    %18 = arith.select %16, %3, %17 : vector<128x4xi1>, vector<128x4xf32>
    %cst_6 = arith.constant dense<0.000000e+00> : vector<128xf32>
    %19 = vector.multi_reduction <add>, %18, %cst_6 [1] : vector<128x4xf32> to vector<128xf32>
    %20 = vector.shape_cast %19 : vector<128xf32> to vector<128x1xf32>
    %21 = arith.subf %13, %20 : vector<128x1xf32>
    %cst_7 = arith.constant 0.000000e+00 : f32
    %22 = vector.broadcast %cst_7 : f32 to vector<128x1xf32>
    %23 = arith.maximumf %21, %22 : vector<128x1xf32>
    %cst_8 = arith.constant 0.000000e+00 : f32
    %24 = vector.broadcast %cst_8 : f32 to vector<128x1xf32>
    %25 = arith.subf %24, %23 : vector<128x1xf32>
    %26 = math.exp %25 : vector<128x1xf32>
    %cst_9 = arith.constant 1.000000e+00 : f32
    %27 = vector.broadcast %cst_9 : f32 to vector<128x1xf32>
    %28 = arith.subf %27, %26 : vector<128x1xf32>
    %cst_10 = arith.constant 0.000000e+00 : f32
    %29 = vector.broadcast %cst_10 : f32 to vector<128x1xf32>
    %30 = arith.maximumf %28, %29 : vector<128x1xf32>
    %cst_11 = arith.constant 1.000000e+00 : f32
    %31 = vector.broadcast %cst_11 : f32 to vector<128x1xf32>
    %32 = arith.mulf %31, %30 : vector<128x1xf32>
    %33 = arith.mulf %32, %30 : vector<128x1xf32>
    %c1_i32 = arith.constant 1 : i32
    %34 = vector.broadcast %c1_i32 : i32 to vector<128x1xi32>
    %35 = arith.cmpi eq, %4, %34 : vector<128x1xi32>
    %cst_12 = arith.constant 2.500000e-01 : f32
    %cst_13 = arith.constant 7.500000e-01 : f32
    %36 = vector.broadcast %cst_12 : f32 to vector<128x1xf32>
    %37 = vector.broadcast %cst_13 : f32 to vector<128x1xf32>
    %38 = arith.select %35, %36, %37 : vector<128x1xi1>, vector<128x1xf32>
    %c0_i32_14 = arith.constant 0 : i32
    %39 = vector.broadcast %c0_i32_14 : i32 to vector<128x1xi32>
    %40 = arith.cmpi sge, %4, %39 : vector<128x1xi32>
    %41 = arith.extui %40 : vector<128x1xi1> to vector<128x1xi32>
    %42 = arith.sitofp %41 : vector<128x1xi32> to vector<128x1xf32>
    %43 = arith.mulf %33, %23 : vector<128x1xf32>
    %44 = arith.mulf %43, %38 : vector<128x1xf32>
    %45 = arith.mulf %44, %42 : vector<128x1xf32>
    %c0_15 = arith.constant 0 : index
    %c0_16 = arith.constant 0 : index
    %46 = vector.load %arg5[%c0_15, %c0_16] : memref<1x1xf32, #tpu.memory_space<vmem>>, vector<1x1xf32>
    %cst_17 = arith.constant dense<0.000000e+00> : vector<1xf32>
    %47 = vector.multi_reduction <add>, %45, %cst_17 [0] : vector<128x1xf32> to vector<1xf32>
    %48 = vector.shape_cast %47 : vector<1xf32> to vector<1x1xf32>
    %49 = arith.addf %46, %48 : vector<1x1xf32>
    %c0_18 = arith.constant 0 : index
    %c0_19 = arith.constant 0 : index
    %50 = vector.load %arg5[%c0_18, %c0_19] : memref<1x1xf32, #tpu.memory_space<vmem>>, vector<1x1xf32>
    tpu.vector_store %arg5[%c0_18, %c0_19], %49 {strides = array<i32>} : memref<1x1xf32, #tpu.memory_space<vmem>>, vector<1x1xf32>,
    %c0_i32_20 = arith.constant 0 : i32
    %51 = arith.cmpi eq, %arg1, %c0_i32_20 : i32
    %52 = arith.extui %51 : i1 to i32
    %c0_i32_21 = arith.constant 0 : i32
    %53 = arith.cmpi ne, %52, %c0_i32_21 : i32
    scf.if %53 {
      %c0_22 = arith.constant 0 : index
      %c0_23 = arith.constant 0 : index
      %54 = vector.load %arg5[%c0_22, %c0_23] : memref<1x1xf32, #tpu.memory_space<vmem>>, vector<1x1xf32>
      %c0_24 = arith.constant 0 : index
      %c0_25 = arith.constant 0 : index
      %c0_26 = arith.constant 0 : index
      %55 = vector.load %arg4[%c0_24, %c0_25, %c0_26] : memref<1x1x1xf32, #tpu.memory_space<vmem>>, vector<1x1x1xf32>
      %56 = vector.shape_cast %55 : vector<1x1x1xf32> to vector<1x1xf32>
      %57 = vector.shape_cast %54 : vector<1x1xf32> to vector<1x1x1xf32>
      tpu.vector_store %arg4[%c0_24, %c0_25, %c0_26], %57 {strides = array<i32>} : memref<1x1x1xf32, #tpu.memory_space<vmem>>, vector<1x1x1xf32>,
    } else {
    }
    return
  }
  func.func @transform_0(%arg0: i32, %arg1: i32) -> (i32, i32) {
    %c1_i32 = arith.constant 1 : i32
    %0 = arith.muli %arg0, %c1_i32 : i32
    %1 = arith.addi %0, %arg1 : i32
    %c0_i32 = arith.constant 0 : i32
    %c0_i32_0 = arith.constant 0 : i32
    return %1, %c0_i32 : i32, i32
  }
  func.func @transform_1(%arg0: i32, %arg1: i32) -> (i32, i32) {
    %c1_i32 = arith.constant 1 : i32
    %0 = arith.muli %arg0, %c1_i32 : i32
    %1 = arith.addi %0, %arg1 : i32
    %c0_i32 = arith.constant 0 : i32
    %c0_i32_0 = arith.constant 0 : i32
    return %1, %c0_i32 : i32, i32
  }
  func.func @transform_2(%arg0: i32, %arg1: i32) -> (i32, i32, i32) {
    %c0_i32 = arith.constant 0 : i32
    %c0_i32_0 = arith.constant 0 : i32
    %c0_i32_1 = arith.constant 0 : i32
    return %arg0, %c0_i32, %c0_i32_0 : i32, i32, i32
  }
}

</mosaic_0001>

<bundles_post_ra>
// kernel: tpu_custom_call.1
= control target key start
LH: loop header
LB: loop body
LE: loop exit
PB: predicated region body
PF: predicated region fallthrough
CT: control target
= control target key end

     0   :  { %vm94_vm0 = vcmask 31744   ;;  %v892_v6 = vmov 0   ;;  %s1511_s0 = inlined_call_operand.vmem [shape: f32[128,4], index: 0, kind: input, shape index: {}]   ;;  %s1512_s1 = inlined_call_operand.vmem [shape: s32[128,1], index: 1, kind: input, shape index: {}]   ;;  %s1513_s2 = inlined_call_operand.hbm [shape: f32[1,1,1], index: 2, kind: output, shape index: {}]  }
   0x1   :  { %v914_v0 = vld [vmem:[%s1511_s0 + $0x10] sm:$0xff]  ;;  %v919_v1 = vld [vmem:[%s1511_s0] sm:$0xff]  ;;  %v924_v2 = vld [vmem:[%s1511_s0 + $0x18] sm:$0xff]  ;;  %767 = vset.pattern.permute.xlu1 %v892_v6  ;;  %766 = vset.pattern.permute.xlu0 %v892_v6 }
   0x2   :  { %v101_v3 = vsel %vm94_vm0, %v914_v0, -inf  ;;  %v95_v4 = vsel %vm94_vm0, %v919_v1, -inf  ;;  %v933_v5 = vld [vmem:[%s1511_s0 + $0x8] sm:$0xff]  ;;  %v104_v7 = vsel %vm94_vm0, %v924_v2, -inf  ;;  %v947_v10 = vld [vmem:[%s1511_s0 + $0x20] sm:$0xff]  ;;  %v956_v13 = vld [vmem:[%s1511_s0 + $0x38] sm:$0xff] }
   0x3   :  { %102 = vmax.xlane.f32.xlu1 %v101_v3  ;;  %96 = vmax.xlane.f32.xlu0 %v95_v4  ;;  %v98_v8 = vsel %vm94_vm0, %v933_v5, -inf  ;;  %v942_v9 = vld [vmem:[%s1511_s0 + $0x28] sm:$0xff]  ;;  %v107_v12 = vsel %vm94_vm0, %v947_v10, -inf  ;;  %v961_v14 = vld [vmem:[%s1511_s0 + $0x30] sm:$0xff]  ;;  %v116_v15 = vsel %vm94_vm0, %v956_v13, -inf  ;;  %v975_v18 = vld [vmem:[%s1511_s0 + $0x40] sm:$0xff] }
   0x4   :  { %v110_v11 = vsel %vm94_vm0, %v942_v9, -inf  ;;  %v113_v16 = vsel %vm94_vm0, %v961_v14, -inf  ;;  %v970_v17 = vld [vmem:[%s1511_s0 + $0x48] sm:$0xff] }
   0x7   :  { %105 = vmax.xlane.f32.xlu1 %v104_v7  ;;  %99 = vmax.xlane.f32.xlu0 %v98_v8 }
   0xb   :  { %111 = vmax.xlane.f32.xlu1 %v110_v11  ;;  %108 = vmax.xlane.f32.xlu0 %v107_v12 }
   0xc   :  { %7 = vsyncpa [#allocation4], 0  ;;  %v122_v19 = vsel %vm94_vm0, %v970_v17, -inf  ;;  %v119_v20 = vsel %vm94_vm0, %v975_v18, -inf  ;;  %v984_v21 = vld [vmem:[%s1511_s0 + $0x58] sm:$0xff]  ;;  %v989_v22 = vld [vmem:[%s1511_s0 + $0x50] sm:$0xff]  ;;  %v287_v63 = vlaneseq }
   0xd   :  { %v128_v23 = vsel %vm94_vm0, %v984_v21, -inf  ;;  %v125_v24 = vsel %vm94_vm0, %v989_v22, -inf  ;;  %v998_v25 = vld [vmem:[%s1511_s0 + $0x68] sm:$0xff]  ;;  %v1003_v26 = vld [vmem:[%s1511_s0 + $0x60] sm:$0xff]  ;;  %v1012_v29 = vld [vmem:[%s1511_s0 + $0x78] sm:$0xff] }
   0xe   :  { %v134_v27 = vsel %vm94_vm0, %v998_v25, -inf  ;;  %v131_v28 = vsel %vm94_vm0, %v1003_v26, -inf  ;;  %v1017_v30 = vld [vmem:[%s1511_s0 + $0x70] sm:$0xff]  ;;  %v140_v31 = vsel %vm94_vm0, %v1012_v29, -inf  ;;  %v1026_v33 = vld [vmem:[%s1512_s1 + $0x8] sm:$0xff]  ;;  %v1037_v35 = vld [vmem:[%s1512_s1] sm:$0xff] }
   0xf   :  { %117 = vmax.xlane.f32.xlu1 %v116_v15  ;;  %114 = vmax.xlane.f32.xlu0 %v113_v16  ;;  %v137_v32 = vsel %vm94_vm0, %v1017_v30, -inf  ;;  %v1032_v34 = vld [vmem:[%s1512_s1 + $0x10] sm:$0xff]  ;;  %v1044_v36 = vld [vmem:[%s1512_s1 + $0x18] sm:$0xff]  ;;  %v1049_v37 = vld [vmem:[%s1512_s1 + $0x48] sm:$0xff]  ;;  %v1145_v12 = vand.u32 127, %v287_v63 }
  0x10   :  { %v1056_v38 = vld [vmem:[%s1512_s1 + $0x20] sm:$0xff]  ;;  %v1061_v39 = vld [vmem:[%s1512_s1 + $0x58] sm:$0xff]  ;;  %v1068_v40 = vld [vmem:[%s1512_s1 + $0x28] sm:$0xff] }
  0x11   :  { %v91_v41 = vld [vmem:[%s1512_s1 + $0x68] sm:$0xff]  ;;  %v1077_v42 = vld [vmem:[%s1512_s1 + $0x30] sm:$0xff]  ;;  %v93_v43 = vld [vmem:[%s1512_s1 + $0x78] sm:$0xff] }
  0x12   :  { %v1086_v44 = vld [vmem:[%s1512_s1 + $0x38] sm:$0xff]  ;;  %v1092_v45 = vld [vmem:[%s1512_s1 + $0x40] sm:$0xff]  ;;  %v1098_v46 = vld [vmem:[%s1512_s1 + $0x50] sm:$0xff] }
  0x13   :  { %123 = vmax.xlane.f32.xlu1 %v122_v19  ;;  %120 = vmax.xlane.f32.xlu0 %v119_v20  ;;  %v90_v47 = vld [vmem:[%s1512_s1 + $0x60] sm:$0xff]  ;;  %v92_v48 = vld [vmem:[%s1512_s1 + $0x70] sm:$0xff] }
  0x17   :  { %129 = vmax.xlane.f32.xlu1 %v128_v23  ;;  %126 = vmax.xlane.f32.xlu0 %v125_v24 }
  0x1b   :  { %135 = vmax.xlane.f32.xlu1 %v134_v27  ;;  %132 = vmax.xlane.f32.xlu0 %v131_v28 }
  0x1f   :  { %141 = vmax.xlane.f32.xlu1 %v140_v31  ;;  %138 = vmax.xlane.f32.xlu0 %v137_v32 }
  0x30   :  { %293 = vperm.xlu1 %767, %v1026_v33  }
  0x34   :  { %296 = vperm.xlu1 %767, %v1032_v34  }
  0x35   :  { %290 = vperm.xlu0 %766, %v1037_v35  }
  0x38   :  { %299 = vperm.xlu1 %767, %v1044_v36  }
  0x39   :  { %317 = vperm.xlu0 %766, %v1049_v37  }
  0x3c   :  { %302 = vperm.xlu1 %767, %v1056_v38  }
  0x3d   :  { %323 = vperm.xlu0 %766, %v1061_v39  }
  0x40   :  { %305 = vperm.xlu1 %767, %v1068_v40  }
  0x41   :  { %329 = vperm.xlu0 %766, %v91_v41  }
  0x44   :  { %308 = vperm.xlu1 %767, %v1077_v42  }
  0x45   :  { %335 = vperm.xlu0 %766, %v93_v43  }
  0x48   :  { %311 = vperm.xlu1 %767, %v1086_v44  }
  0x4c   :  { %314 = vperm.xlu1 %767, %v1092_v45  }
  0x50   :  { %320 = vperm.xlu1 %767, %v1098_v46  }
  0x54   :  { %326 = vperm.xlu1 %767, %v90_v47  }
  0x58   :  { %332 = vperm.xlu1 %767, %v92_v48  }
  0x90   :  { %v1107_v49 = vpop.xlane.xlu1 %102  ;;  %v1109_v50 = vpop.xlane.xlu0 %96 }
  0x91   :  { %v143_v61 = vsub.f32 %v919_v1, %v1109_v50  ;;  %v145_v16 = vsub.f32 %v914_v0, %v1107_v49 }
  0x93   :  { %v159_v3 = vmul.f32 1.442695, %v143_v61  ;;  %v163_v32 = vmul.f32 1.442695, %v145_v16 }
  0x94   :  { %v1111_v51 = vpop.xlane.xlu1 %105  ;;  %v1113_v52 = vpop.xlane.xlu0 %99 }
  0x95   :  { %v146_v4 = vsub.f32 %v924_v2, %v1111_v51  ;;  %v144_v7 = vsub.f32 %v933_v5, %v1113_v52  ;;  %768 = vpow2.f32 %v159_v3 }
  0x97   :  { %v165_v15 = vmul.f32 1.442695, %v146_v4  ;;  %v161_v19 = vmul.f32 1.442695, %v144_v7 }
  0x98   :  { %v1115_v53 = vpop.xlane.xlu1 %111  ;;  %v1117_v54 = vpop.xlane.xlu0 %108 }
  0x99   :  { %v148_v11 = vsub.f32 %v942_v9, %v1115_v53  ;;  %770 = vpow2.f32 %v165_v15  ;;  %v147_v47 = vsub.f32 %v947_v10, %v1117_v54 }
  0x9a   :  { %772 = vpow2.f32 %v161_v19 }
  0x9b   :  { %v169_v24 = vmul.f32 1.442695, %v148_v11  ;;  %v167_v15 = vmul.f32 1.442695, %v147_v47 }
  0x9c   :  { %v1119_v55 = vpop.xlane.xlu1 %117  ;;  %v1121_v56 = vpop.xlane.xlu0 %114 }
  0x9d   :  { %v150_v27 = vsub.f32 %v956_v13, %v1119_v55  ;;  %774 = vpow2.f32 %v169_v24  ;;  %v149_v16 = vsub.f32 %v961_v14, %v1121_v56 }
  0x9e   :  { %776 = vpow2.f32 %v163_v32 }
  0x9f   :  { %v173_v48 = vmul.f32 1.442695, %v150_v27  ;;  %v769_v7 = vpop.eup %768 }
  0xa0   :  { %v1123_v57 = vpop.xlane.xlu1 %123  ;;  %v1125_v58 = vpop.xlane.xlu0 %120  ;;  %v191_v24 = vsel %vm94_vm0, %v769_v7, 0.0 }
  0xa1   :  { %v152_v61 = vsub.f32 %v970_v17, %v1123_v57  ;;  %778 = vpow2.f32 %v173_v48  ;;  %v151_v32 = vsub.f32 %v975_v18, %v1125_v58 }
  0xa2   :  { %780 = vpow2.f32 %v167_v15 }
  0xa3   :  { %v177_v19 = vmul.f32 1.442695, %v152_v61  ;;  %v771_v27 = vpop.eup %770 }
  0xa4   :  { %v1127_v59 = vpop.xlane.xlu1 %129  ;;  %v1129_v60 = vpop.xlane.xlu0 %126 }
  0xa5   :  { %782 = vpow2.f32 %v177_v19 }
  0xa8   :  { %v1133_v62 = vpop.xlane.xlu1 %135  ;;  %v1137_v6 = vpop.xlane.xlu0 %132 }
  0xa9   :  { %v156_v19 = vsub.f32 %v998_v25, %v1133_v62 }
  0xac   :  { %v1141_v8 = vpop.xlane.xlu1 %141  ;;  %v1149_v20 = vpop.xlane.xlu0 %138 }
  0xb0   :  { %v294_v23 = vpop.permute.xlu1 %293 }
  0xb1   :  { %vm338_vm1 = vcmp.eq.s32.totalorder %v1145_v12, %v294_v23 }
  0xb2   :  { %v354_v28 = vsel %vm338_vm1, %v933_v5, 0.0 }
  0xb3   :  { %v372_v31 = vsel %vm94_vm0, %v354_v28, 0.0 }
  0xb4   :  { %v297_v41 = vpop.permute.xlu1 %296  ;;  %373 = vadd.xlane.f32.xlu0 %v372_v31  ;;  %v291_v43 = vpop.permute.xlu0 %290  ;;  %v171_v31 = vmul.f32 1.442695, %v149_v16 }
  0xb5   :  { %vm339_vm2 = vcmp.eq.s32.totalorder %v1145_v12, %v297_v41  ;;  %vm337_vm3 = vcmp.eq.s32.totalorder %v1145_v12, %v291_v43  ;;  %v773_v41 = vpop.eup %772 }
  0xb6   :  { %v355_v5 = vsel %vm339_vm2, %v914_v0, 0.0  ;;  %v353_v63 = vsel %vm337_vm3, %v919_v1, 0.0  ;;  %v153_v0 = vsub.f32 %v989_v22, %v1129_v60  ;;  %v775_v48 = vpop.eup %774  ;;  %784 = vpow2.f32 %v171_v31 }
  0xb7   :  { %v375_v3 = vsel %vm94_vm0, %v355_v5, 0.0  ;;  %v369_v4 = vsel %vm94_vm0, %v353_v63, 0.0  ;;  %v200_v5 = vsel %vm94_vm0, %v771_v27, 0.0  ;;  %v175_v63 = vmul.f32 1.442695, %v151_v32 }
  0xb8   :  { %v300_v11 = vpop.permute.xlu1 %299  ;;  %376 = vadd.xlane.f32.xlu0 %v375_v3  ;;  %370 = vadd.xlane.f32.xlu1 %v369_v4  ;;  %v179_v43 = vmul.f32 1.442695, %v153_v0  ;;  %v155_v4 = vsub.f32 %v1003_v26, %v1137_v6  ;;  %v194_v15 = vsel %vm94_vm0, %v773_v41, 0.0  ;;  %v185_v31 = vmul.f32 1.442695, %v156_v19 }
  0xb9   :  { %vm340_vm4 = vcmp.eq.s32.totalorder %v1145_v12, %v300_v11  ;;  %v777_v11 = vpop.eup %776  ;;  %v157_v32 = vsub.f32 %v1017_v30, %v1149_v20  ;;  %vm60_vm2 = vcmask 0   ;;  %vm578_vm3 = vcmp.ge.s32.totalorder %v1026_v33, 0 }
  0xba   :  { %v356_v1 = vsel %vm340_vm4, %v924_v2, 0.0  ;;  %v154_v2 = vsub.f32 %v984_v21, %v1127_v59  ;;  %786 = vpow2.f32 %v179_v43  ;;  %v779_v16 = vpop.eup %778  ;;  %v183_v0 = vmul.f32 1.442695, %v155_v4 }
  0xbb   :  { %v378_v23 = vsel %vm94_vm0, %v356_v1, 0.0  ;;  %788 = vpow2.f32 %v175_v63  ;;  %v781_v1 = vpop.eup %780  ;;  %vm547_vm4 = vcmp.eq.s32.totalorder %v1032_v34, 1 }
  0xbc   :  { %v303_v28 = vpop.permute.xlu1 %302  ;;  %379 = vadd.xlane.f32.xlu0 %v378_v23  ;;  %192 = vadd.xlane.f32.xlu1 %v191_v24  ;;  %v181_v3 = vmul.f32 1.442695, %v154_v2  ;;  %v197_v23 = vsel %vm94_vm0, %v777_v11, 0.0  ;;  %v212_v24 = vsel %vm94_vm0, %v779_v16, 0.0  ;;  %v783_v27 = vpop.eup %782  ;;  %v203_v2 = vsel %vm94_vm0, %v781_v1, 0.0 }
  0xbd   :  { %vm341_vm5 = vcmp.eq.s32.totalorder %v1145_v12, %v303_v28  ;;  %v218_v43 = vsel %vm94_vm0, %v783_v27, 0.0  ;;  %v318_v27 = vpop.permute.xlu0 %317 }
  0xbe   :  { %v357_v47 = vsel %vm341_vm5, %v947_v10, 0.0  ;;  %v206_v10 = vsel %vm94_vm0, %v775_v48, 0.0  ;;  %790 = vpow2.f32 %v181_v3  ;;  %v158_v48 = vsub.f32 %v1012_v29, %v1141_v8 }
  0xbf   :  { %v381_v61 = vsel %vm94_vm0, %v357_v47, 0.0  ;;  %792 = vpow2.f32 %v183_v0  ;;  %vm346_vm10 = vcmp.eq.s32.totalorder %v1145_v12, %v318_v27  ;;  %v1516_v27 = vmov 0.0  }
  0xc0   :  { %382 = vadd.xlane.f32.xlu0 %v381_v61  ;;  %201 = vadd.xlane.f32.xlu1 %v200_v5  ;;  %v306_v7 = vpop.permute.xlu1 %305  ;;  %v785_v41 = vpop.eup %784  ;;  %794 = vpow2.f32 %v185_v31  ;;  %v187_v61 = vmul.f32 1.442695, %v157_v32  ;;  %61 = vst.msk [vmem:[#allocation2] sm:$0x1] %vm60_vm2, %v1516_v27  ;;  %vm579_vm5 = vcmp.ge.s32.totalorder %v1032_v34, 0 }
  0xc1   :  { %v209_v3 = vsel %vm94_vm0, %v785_v41, 0.0  ;;  %vm342_vm6 = vcmp.eq.s32.totalorder %v1145_v12, %v306_v7  ;;  %v1261_v34 = vsel %vm579_vm5, 1.0, %v1516_v27  ;;  %vm553_vm5 = vcmp.eq.s32.totalorder %v1092_v45, 1 }
  0xc2   :  { %796 = vpow2.f32 %v187_v61  ;;  %v358_v1 = vsel %vm342_vm6, %v942_v9, 0.0  ;;  %vm545_vm6 = vcmp.eq.s32.totalorder %v1037_v35, 1 }
  0xc4   :  { %195 = vadd.xlane.f32.xlu0 %v194_v15  ;;  %207 = vadd.xlane.f32.xlu1 %v206_v10  ;;  %v309_v28 = vpop.permute.xlu1 %308  ;;  %v787_v47 = vpop.eup %786  ;;  %v189_v15 = vmul.f32 1.442695, %v158_v48 }
  0xc5   :  { %v789_v63 = vpop.eup %788  ;;  %v221_v4 = vsel %vm94_vm0, %v787_v47, 0.0  ;;  %vm343_vm7 = vcmp.eq.s32.totalorder %v1145_v12, %v309_v28 }
  0xc6   :  { %v215_v10 = vsel %vm94_vm0, %v789_v63, 0.0  ;;  %798 = vpow2.f32 %v189_v15  ;;  %v359_v31 = vsel %vm343_vm7, %v961_v14, 0.0  ;;  %vm577_vm7 = vcmp.ge.s32.totalorder %v1037_v35, 0 }
  0xc7   :  { %v387_v41 = vsel %vm94_vm0, %v359_v31, 0.0 }
  0xc8   :  { %198 = vadd.xlane.f32.xlu0 %v197_v23  ;;  %213 = vadd.xlane.f32.xlu1 %v212_v24  ;;  %v312_v5 = vpop.permute.xlu1 %311  ;;  %v791_v11 = vpop.eup %790  ;;  %v384_v23 = vsel %vm94_vm0, %v358_v1, 0.0 }
  0xc9   :  { %v224_v16 = vsel %vm94_vm0, %v791_v11, 0.0  ;;  %v793_v19 = vpop.eup %792  ;;  %vm344_vm8 = vcmp.eq.s32.totalorder %v1145_v12, %v312_v5  ;;  %v362_v11 = vsel %vm346_vm10, %v970_v17, 0.0  ;;  %vm554_vm10 = vcmp.eq.s32.totalorder %v1049_v37, 1 }
  0xca   :  { %v227_v24 = vsel %vm94_vm0, %v793_v19, 0.0  ;;  %v795_v7 = vpop.eup %794  ;;  %v360_v28 = vsel %vm344_vm8, %v956_v13, 0.0  ;;  %vm548_vm8 = vcmp.eq.s32.totalorder %v1044_v36, 1 }
  0xcb   :  { %v230_v9 = vsel %vm94_vm0, %v795_v7, 0.0  ;;  %v390_v47 = vsel %vm94_vm0, %v360_v28, 0.0 }
  0xcc   :  { %204 = vadd.xlane.f32.xlu0 %v203_v2  ;;  %219 = vadd.xlane.f32.xlu1 %v218_v43  ;;  %v315_v0 = vpop.permute.xlu1 %314  ;;  %v797_v2 = vpop.eup %796 }
  0xcd   :  { %vm345_vm9 = vcmp.eq.s32.totalorder %v1145_v12, %v315_v0  ;;  %v324_v43 = vpop.permute.xlu0 %323  ;;  %v233_v48 = vsel %vm94_vm0, %v797_v2, 0.0 }
  0xce   :  { %v361_v5 = vsel %vm345_vm9, %v975_v18, 0.0  ;;  %vm348_vm12 = vcmp.eq.s32.totalorder %v1145_v12, %v324_v43  ;;  %vm580_vm9 = vcmp.ge.s32.totalorder %v1044_v36, 0 }
  0xcf   :  { %v393_v63 = vsel %vm94_vm0, %v361_v5, 0.0  ;;  %v364_v19 = vsel %vm348_vm12, %v984_v21, 0.0  ;;  %vm549_vm12 = vcmp.eq.s32.totalorder %v1056_v38, 1 }
  0xd0   :  { %210 = vadd.xlane.f32.xlu0 %v209_v3  ;;  %222 = vadd.xlane.f32.xlu1 %v221_v4  ;;  %v321_v32 = vpop.permute.xlu1 %320  ;;  %v799_v14 = vpop.eup %798  ;;  %v402_v0 = vsel %vm94_vm0, %v364_v19, 0.0  ;;  %v1283_v19 = vsel %vm580_vm9, 1.0, %v1516_v27  ;;  %vm587_vm9 = vcmp.ge.s32.totalorder %v1098_v46, 0 }
  0xd1   :  { %vm347_vm11 = vcmp.eq.s32.totalorder %v1145_v12, %v321_v32  ;;  %v236_v13 = vsel %vm94_vm0, %v799_v14, 0.0  ;;  %v330_v3 = vpop.permute.xlu0 %329  ;;  %v1514_v14 = vmov 0.75  }
  0xd2   :  { %v363_v4 = vsel %vm347_vm11, %v989_v22, 0.0  ;;  %vm350_vm14 = vcmp.eq.s32.totalorder %v1145_v12, %v330_v3  ;;  %v1265_v3 = vsel %vm545_vm6, 0.25, %v1514_v14  ;;  %vm586_vm11 = vcmp.ge.s32.totalorder %v1049_v37, 0 }
  0xd3   :  { %v399_v15 = vsel %vm94_vm0, %v363_v4, 0.0  ;;  %vm585_vm6 = vcmp.ge.s32.totalorder %v1092_v45, 0 }
  0xd4   :  { %216 = vadd.xlane.f32.xlu0 %v215_v10  ;;  %225 = vadd.xlane.f32.xlu1 %v224_v16  ;;  %v327_v61 = vpop.permute.xlu1 %326  ;;  %v396_v10 = vsel %vm94_vm0, %v362_v11, 0.0 }
  0xd5   :  { %vm349_vm13 = vcmp.eq.s32.totalorder %v1145_v12, %v327_v61  ;;  %v336_v17 = vpop.permute.xlu0 %335 }
  0xd6   :  { %v365_v16 = vsel %vm349_vm13, %v1003_v26, 0.0  ;;  %vm352_vm1 = vcmp.eq.s32.totalorder %v1145_v12, %v336_v17  ;;  %vm581_vm13 = vcmp.ge.s32.totalorder %v1056_v38, 0  ;;  %v1286_v17 = vsel %vm554_vm10, 0.25, %v1514_v14 }
  0xd7   :  { %v405_v22 = vsel %vm94_vm0, %v365_v16, 0.0  ;;  %v1279_v16 = vsel %vm548_vm8, 0.25, %v1514_v14  ;;  %vm674_vm8 = vcmask 7168   ;;  %vm556_vm10 = vcmp.eq.s32.totalorder %v1061_v39, 1 }
  0xd8   :  { %385 = vadd.xlane.f32.xlu0 %v384_v23  ;;  %228 = vadd.xlane.f32.xlu1 %v227_v24  ;;  %v333_v18 = vpop.permute.xlu1 %332  ;;  %v366_v23 = vsel %vm350_vm14, %v998_v25, 0.0  ;;  %v368_v24 = vsel %vm352_vm1, %v1012_v29, 0.0  ;;  %vm550_vm14 = vcmp.eq.s32.totalorder %v1068_v40, 1  ;;  %vm551_vm1 = vcmp.eq.s32.totalorder %v1077_v42, 1 }
  0xd9   :  { %vm351_vm15 = vcmp.eq.s32.totalorder %v1145_v12, %v333_v18  ;;  %v408_v21 = vsel %vm94_vm0, %v366_v23, 0.0  ;;  %v414_v7 = vsel %vm94_vm0, %v368_v24, 0.0 }
  0xda   :  { %v367_v1 = vsel %vm351_vm15, %v1017_v30, 0.0  ;;  %vm582_vm15 = vcmp.ge.s32.totalorder %v1068_v40, 0 }
  0xdb   :  { %v411_v26 = vsel %vm94_vm0, %v367_v1, 0.0  ;;  %vm546_vm0 = vcmp.eq.s32.totalorder %v1026_v33, 1  ;;  %v1258_v33 = vsel %vm547_vm4, 0.25, %v1514_v14  ;;  %vm584_vm4 = vcmp.ge.s32.totalorder %v1086_v44, 0 }
  0xdc   :  { %388 = vadd.xlane.f32.xlu0 %v387_v41  ;;  %231 = vadd.xlane.f32.xlu1 %v230_v9  ;;  %v1251_v61 = vsel %vm546_vm0, 0.25, %v1514_v14  ;;  %vm583_vm0 = vcmp.ge.s32.totalorder %v1077_v42, 0 }
  0xe0   :  { %391 = vadd.xlane.f32.xlu0 %v390_v47  ;;  %234 = vadd.xlane.f32.xlu1 %v233_v48 }
  0xe4   :  { %394 = vadd.xlane.f32.xlu0 %v393_v63  ;;  %237 = vadd.xlane.f32.xlu1 %v236_v13  ;;  %v1255_v13 = vsel %vm578_vm3, 1.0, %v1516_v27  ;;  %vm552_vm3 = vcmp.eq.s32.totalorder %v1086_v44, 1 }
  0xe8   :  { %400 = vadd.xlane.f32.xlu0 %v399_v15  ;;  %397 = vadd.xlane.f32.xlu1 %v396_v10  ;;  %v1276_v10 = vsel %vm577_vm7, 1.0, %v1516_v27  ;;  %vm555_vm7 = vcmp.eq.s32.totalorder %v1098_v46, 1 }
  0xec   :  { %406 = vadd.xlane.f32.xlu0 %v405_v22  ;;  %403 = vadd.xlane.f32.xlu1 %v402_v0 }
  0xf0   :  { %412 = vadd.xlane.f32.xlu0 %v411_v26  ;;  %409 = vadd.xlane.f32.xlu1 %v408_v21  ;;  %v1292_v26 = vsel %vm586_vm11, 1.0, %v1516_v27  ;;  %v1297_v21 = vsel %vm549_vm12, 0.25, %v1514_v14  ;;  %vm588_vm11 = vcmp.ge.s32.totalorder %v1061_v39, 0 }
  0xf4   :  { %415 = vadd.xlane.f32.xlu1 %v414_v7  ;;  %v1301_v7 = vsel %vm581_vm13, 1.0, %v1516_v27 }
 0x141   :  { %v1239_v30 = vpop.xlane.xlu0 %373 }
 0x145   :  { %v371_v25 = vpop.xlane.xlu1 %370  ;;  %v1241_v12 = vpop.xlane.xlu0 %376 }
 0x149   :  { %v193_v31 = vpop.xlane.xlu1 %192  ;;  %v380_v32 = vpop.xlane.xlu0 %379 }
 0x14a   :  { %800 = vlog2.f32 %v193_v31 }
 0x14d   :  { %v202_v41 = vpop.xlane.xlu1 %201  ;;  %v1243_v9 = vpop.xlane.xlu0 %382 }
 0x14e   :  { %802 = vlog2.f32 %v202_v41 }
 0x151   :  { %v208_v29 = vpop.xlane.xlu1 %207  ;;  %v196_v2 = vpop.xlane.xlu0 %195 }
 0x152   :  { %804 = vlog2.f32 %v196_v2 }
 0x153   :  { %806 = vlog2.f32 %v208_v29 }
 0x154   :  { %v801_v28 = vpop.eup %800 }
 0x155   :  { %v240_v43 = vmul.f32 0.6931472, %v801_v28  ;;  %v214_v47 = vpop.xlane.xlu1 %213  ;;  %v199_v48 = vpop.xlane.xlu0 %198 }
 0x156   :  { %808 = vlog2.f32 %v199_v48 }
 0x157   :  { %v271_v5 = vadd.f32 %v240_v43, %v1109_v50  ;;  %810 = vlog2.f32 %v214_v47  ;;  %v1315_v47 = vsel %vm582_vm15, 1.0, %v1516_v27 }
 0x158   :  { %v803_v63 = vpop.eup %802 }
 0x159   :  { %v417_v4 = vsub.f32 %v271_v5, %v371_v25  ;;  %v246_v50 = vmul.f32 0.6931472, %v803_v63  ;;  %v220_v11 = vpop.xlane.xlu1 %219  ;;  %v205_v18 = vpop.xlane.xlu0 %204 }
 0x15a   :  { %812 = vlog2.f32 %v205_v18 }
 0x15b   :  { %v1272_v15 = vmax.f32 %v417_v4, 0.0  ;;  %v274_v35 = vadd.f32 %v246_v50, %v1111_v51  ;;  %814 = vlog2.f32 %v220_v11  ;;  %v1326_v4 = vsel %vm583_vm0, 1.0, %v1516_v27 }
 0x15c   :  { %v805_v36 = vpop.eup %804 }
 0x15d   :  { %v449_v22 = vsub.f32 0.0, %v1272_v15  ;;  %v420_v51 = vsub.f32 %v274_v35, %v380_v32  ;;  %v223_v0 = vpop.xlane.xlu1 %222  ;;  %v211_v1 = vpop.xlane.xlu0 %210  ;;  %v242_v24 = vmul.f32 0.6931472, %v805_v36  ;;  %v1309_v32 = vsel %vm550_vm14, 0.25, %v1514_v14 }
 0x15e   :  { %v807_v23 = vpop.eup %806  ;;  %816 = vlog2.f32 %v211_v1 }
 0x15f   :  { %v465_v25 = vmul.f32 1.442695, %v449_v22  ;;  %v1303_v31 = vmax.f32 %v420_v51, 0.0  ;;  %v272_v37 = vadd.f32 %v242_v24, %v1113_v52  ;;  %818 = vlog2.f32 %v223_v0 }
 0x160   :  { %v809_v38 = vpop.eup %808  ;;  %v250_v29 = vmul.f32 0.6931472, %v807_v23  ;;  %v1318_v52 = vsel %vm551_vm1, 0.25, %v1514_v14  ;;  %v1340_v0 = vsel %vm584_vm4, 1.0, %v1516_v27 }
 0x161   :  { %820 = vpow2.f32 %v465_v25  ;;  %v452_v41 = vsub.f32 0.0, %v1303_v31  ;;  %v226_v2 = vpop.xlane.xlu1 %225  ;;  %v217_v28 = vpop.xlane.xlu0 %216  ;;  %v418_v43 = vsub.f32 %v272_v37, %v1239_v30  ;;  %v244_v40 = vmul.f32 0.6931472, %v809_v38 }
 0x162   :  { %822 = vlog2.f32 %v226_v2  ;;  %v811_v5 = vpop.eup %810  ;;  %v276_v11 = vadd.f32 %v250_v29, %v1115_v53  ;;  %v1350_v25 = vsel %vm553_vm5, 0.25, %v1514_v14 }
 0x163   :  { %v471_v48 = vmul.f32 1.442695, %v452_v41  ;;  %824 = vlog2.f32 %v217_v28  ;;  %v1322_v63 = vmax.f32 %v418_v43, 0.0  ;;  %v273_v42 = vadd.f32 %v244_v40, %v1107_v49 }
 0x164   :  { %v813_v30 = vpop.eup %812  ;;  %v1335_v49 = vsel %vm552_vm3, 0.25, %v1514_v14  ;;  %v254_v37 = vmul.f32 0.6931472, %v811_v5  ;;  %v1364_v5 = vsel %vm555_vm7, 0.25, %v1514_v14 }
 0x165   :  { %826 = vpow2.f32 %v471_v48  ;;  %v229_v50 = vpop.xlane.xlu1 %228  ;;  %v386_v18 = vpop.xlane.xlu0 %385  ;;  %v450_v36 = vsub.f32 0.0, %v1322_v63  ;;  %v419_v22 = vsub.f32 %v273_v42, %v1241_v12  ;;  %v248_v51 = vmul.f32 0.6931472, %v813_v30 }
 0x166   :  { %v815_v35 = vpop.eup %814  ;;  %828 = vlog2.f32 %v229_v50  ;;  %v422_v53 = vsub.f32 %v276_v11, %v386_v18  ;;  %v1359_v48 = vsel %vm585_vm6, 1.0, %v1516_v27 }
 0x167   :  { %v467_v1 = vmul.f32 1.442695, %v450_v36  ;;  %v1344_v23 = vmax.f32 %v419_v22, 0.0  ;;  %v275_v12 = vadd.f32 %v248_v51, %v1117_v54  ;;  %v258_v44 = vmul.f32 0.6931472, %v815_v35 }
 0x168   :  { %v817_v24 = vpop.eup %816  ;;  %v1352_v38 = vmax.f32 %v422_v53, 0.0  ;;  %v278_v51 = vadd.f32 %v254_v37, %v1119_v55 }
 0x169   :  { %v232_v41 = vpop.xlane.xlu1 %231  ;;  %v389_v29 = vpop.xlane.xlu0 %388  ;;  %830 = vpow2.f32 %v467_v1  ;;  %v451_v28 = vsub.f32 0.0, %v1344_v23  ;;  %v421_v43 = vsub.f32 %v275_v12, %v1243_v9  ;;  %v252_v40 = vmul.f32 0.6931472, %v817_v24 }
 0x16a   :  { %v819_v2 = vpop.eup %818  ;;  %v454_v42 = vsub.f32 0.0, %v1352_v38  ;;  %832 = vlog2.f32 %v232_v41  ;;  %v280_v1 = vadd.f32 %v258_v44, %v1123_v57 }
 0x16b   :  { %v821_v54 = vpop.eup %820  ;;  %v469_v11 = vmul.f32 1.442695, %v451_v28  ;;  %v1367_v18 = vmax.f32 %v421_v43, 0.0  ;;  %v277_v9 = vadd.f32 %v252_v40, %v1121_v56  ;;  %v260_v45 = vmul.f32 0.6931472, %v819_v2 }
 0x16c   :  { %v823_v30 = vpop.eup %822  ;;  %v497_v50 = vsub.f32 1.0, %v821_v54  ;;  %v475_v36 = vmul.f32 1.442695, %v454_v42 }
 0x16d   :  { %v825_v35 = vpop.eup %824  ;;  %v235_v22 = vpop.xlane.xlu1 %234  ;;  %834 = vpow2.f32 %v469_v11  ;;  %v453_v24 = vsub.f32 0.0, %v1367_v18  ;;  %v262_v43 = vmul.f32 0.6931472, %v823_v30  ;;  %v423_v54 = vsub.f32 %v277_v9, %v389_v29 }
 0x16e   :  { %v392_v53 = vpop.xlane.xlu0 %391  ;;  %v513_v12 = vmax.f32 %v497_v50, 0.0  ;;  %v256_v41 = vmul.f32 0.6931472, %v825_v35  ;;  %836 = vpow2.f32 %v475_v36  ;;  %v281_v29 = vadd.f32 %v260_v45, %v1129_v60 }
 0x16f   :  { %v827_v28 = vpop.eup %826  ;;  %v424_v56 = vsub.f32 %v278_v51, %v392_v53  ;;  %v473_v42 = vmul.f32 1.442695, %v453_v24  ;;  %838 = vlog2.f32 %v235_v22  ;;  %v1373_v55 = vmax.f32 %v423_v54, 0.0 }
 0x170   :  { %v829_v40 = vpop.eup %828  ;;  %v529_v14 = vmul.f32 %v513_v12, %v513_v12  ;;  %v500_v2 = vsub.f32 1.0, %v827_v28  ;;  %v279_v44 = vadd.f32 %v256_v41, %v1125_v58  ;;  %v282_v12 = vadd.f32 %v262_v43, %v1127_v59 }
 0x171   :  { %v264_v27 = vmul.f32 0.6931472, %v829_v40  ;;  %v1375_v37 = vmax.f32 %v424_v56, 0.0  ;;  %v238_v57 = vpop.xlane.xlu1 %237  ;;  %840 = vpow2.f32 %v473_v42  ;;  %v455_v9 = vsub.f32 0.0, %v1373_v55 }
 0x172   :  { %v395_v50 = vpop.xlane.xlu0 %394  ;;  %v625_v11 = vmul.f32 %v529_v14, %v1272_v15  ;;  %v516_v30 = vmax.f32 %v500_v2, 0.0  ;;  %842 = vlog2.f32 %v238_v57 }
 0x173   :  { %v456_v35 = vsub.f32 0.0, %v1375_v37  ;;  %v425_v36 = vsub.f32 %v279_v44, %v395_v50  ;;  %v831_v22 = vpop.eup %830  ;;  %v1385_v58 = vadd.f32 %v264_v27, %v1137_v6  ;;  %v477_v24 = vmul.f32 1.442695, %v455_v9 }
 0x174   :  { %v641_v51 = vmul.f32 %v625_v11, %v1265_v3  ;;  %v532_v53 = vmul.f32 %v516_v30, %v516_v30  ;;  %v833_v14 = vpop.eup %832  ;;  %v498_v15 = vsub.f32 1.0, %v831_v22 }
 0x175   :  { %v479_v41 = vmul.f32 1.442695, %v456_v35  ;;  %v1387_v60 = vmax.f32 %v425_v36, 0.0  ;;  %v398_v45 = vpop.xlane.xlu1 %397  ;;  %v266_v40 = vmul.f32 0.6931472, %v833_v14  ;;  %844 = vpow2.f32 %v477_v24 }
 0x176   :  { %v401_v28 = vpop.xlane.xlu0 %400  ;;  %v657_v54 = vmul.f32 %v1276_v10, %v641_v51  ;;  %v628_v56 = vmul.f32 %v532_v53, %v1303_v31  ;;  %v426_v3 = vsub.f32 %v280_v1, %v398_v45  ;;  %v514_v2 = vmax.f32 %v498_v15, 0.0 }
 0x177   :  { %v457_v59 = vsub.f32 0.0, %v1387_v60  ;;  %v427_v6 = vsub.f32 %v281_v29, %v401_v28  ;;  %v835_v27 = vpop.eup %834  ;;  %846 = vpow2.f32 %v479_v41 }
 0x178   :  { %v675_v43 = vsel %vm674_vm8, %v657_v54, 0.0  ;;  %v644_v42 = vmul.f32 %v628_v56, %v1279_v16  ;;  %v1394_v57 = vmax.f32 %v426_v3, 0.0  ;;  %v837_v44 = vpop.eup %836  ;;  %v530_v50 = vmul.f32 %v514_v2, %v514_v2 }
 0x179   :  { %v499_v10 = vsub.f32 1.0, %v835_v27  ;;  %v481_v11 = vmul.f32 1.442695, %v457_v59  ;;  %v1396_v31 = vmax.f32 %v427_v6, 0.0  ;;  %v404_v1 = vpop.xlane.xlu1 %403  ;;  %v839_v30 = vpop.eup %838  ;;  %v502_v35 = vsub.f32 1.0, %v837_v44 }
 0x17a   :  { %v660_v9 = vmul.f32 %v1283_v19, %v644_v42  ;;  %v458_v29 = vsub.f32 0.0, %v1394_v57  ;;  %v428_v36 = vsub.f32 %v282_v12, %v404_v1  ;;  %v626_v22 = vmul.f32 %v530_v50, %v1322_v63  ;;  %v407_v12 = vpop.xlane.xlu0 %406 }
 0x17b   :  { %v515_v16 = vmax.f32 %v499_v10, 0.0  ;;  %v268_v51 = vmul.f32 0.6931472, %v839_v30  ;;  %848 = vpow2.f32 %v481_v11  ;;  %v841_v53 = vpop.eup %840  ;;  %v518_v14 = vmax.f32 %v502_v35, 0.0 }
 0x17c   :  { %v680_v15 = vsel %vm674_vm8, %v660_v9, 0.0  ;;  %v483_v24 = vmul.f32 1.442695, %v458_v29  ;;  %v459_v41 = vsub.f32 0.0, %v1396_v31  ;;  %v843_v45 = vpop.eup %842  ;;  %v642_v28 = vmul.f32 %v626_v22, %v1251_v61 }
 0x17d   :  { %v531_v19 = vmul.f32 %v515_v16, %v515_v16  ;;  %v501_v54 = vsub.f32 1.0, %v841_v53  ;;  %v1404_v56 = vmax.f32 %v428_v36, 0.0  ;;  %v534_v3 = vmul.f32 %v518_v14, %v518_v14 }
 0x17e   :  { %v1406_v63 = vmul.f32 0.6931472, %v843_v45  ;;  %850 = vpow2.f32 %v483_v24  ;;  %v485_v2 = vmul.f32 1.442695, %v459_v41  ;;  %v658_v59 = vmul.f32 %v1255_v13, %v642_v28  ;;  %v410_v13 = vpop.xlane.xlu1 %409  ;;  %v413_v45 = vpop.xlane.xlu0 %412 }
 0x17f   :  { %v627_v6 = vmul.f32 %v531_v19, %v1344_v23  ;;  %v517_v27 = vmax.f32 %v501_v54, 0.0  ;;  %v460_v42 = vsub.f32 0.0, %v1404_v56  ;;  %v630_v44 = vmul.f32 %v534_v3, %v1352_v38  ;;  %v845_v10 = vpop.eup %844 }
 0x180   :  { %852 = vpow2.f32 %v485_v2  ;;  %v429_v61 = vsub.f32 %v1385_v58, %v407_v12  ;;  %v284_v50 = vadd.f32 %v266_v40, %v1133_v62  ;;  %v676_v11 = vsel %vm674_vm8, %v658_v59, 0.0 }
 0x181   :  { %v643_v1 = vmul.f32 %v627_v6, %v1258_v33  ;;  %v533_v30 = vmul.f32 %v517_v27, %v517_v27  ;;  %v487_v9 = vmul.f32 1.442695, %v460_v42  ;;  %v847_v35 = vpop.eup %846  ;;  %v677_v23 = vadd.f32 %v676_v11, %v675_v43 }
 0x182   :  { %v646_v29 = vmul.f32 %v630_v44, %v1309_v32  ;;  %v503_v36 = vsub.f32 1.0, %v845_v10  ;;  %v1417_v22 = vmax.f32 %v429_v61, 0.0  ;;  %v504_v62 = vsub.f32 1.0, %v847_v35 }
 0x183   :  { %v659_v38 = vmul.f32 %v1261_v34, %v643_v1  ;;  %v629_v58 = vmul.f32 %v533_v30, %v1367_v18  ;;  %854 = vpow2.f32 %v487_v9  ;;  %v430_v53 = vsub.f32 %v284_v50, %v410_v13 }
 0x184   :  { %v662_v40 = vmul.f32 %v1315_v47, %v646_v29  ;;  %v519_v16 = vmax.f32 %v503_v36, 0.0  ;;  %v461_v33 = vsub.f32 0.0, %v1417_v22  ;;  %v520_v24 = vmax.f32 %v504_v62, 0.0 }
 0x185   :  { %v849_v14 = vpop.eup %848  ;;  %v678_v43 = vsel %vm674_vm8, %v659_v38, 0.0  ;;  %v645_v32 = vmul.f32 %v629_v58, %v1297_v21  ;;  %v285_v41 = vadd.f32 %v268_v51, %v1149_v20  ;;  %v1429_v3 = vmax.f32 %v430_v53, 0.0 }
 0x186   :  { %v679_v34 = vadd.f32 %v678_v43, %v677_v23  ;;  %v684_v18 = vsel %vm674_vm8, %v662_v40, 0.0  ;;  %v535_v28 = vmul.f32 %v519_v16, %v519_v16  ;;  %v505_v47 = vsub.f32 1.0, %v849_v14  ;;  %v416_v16 = vpop.xlane.xlu1 %415 }
 0x187   :  { %v661_v19 = vmul.f32 %v1301_v7, %v645_v32  ;;  %v536_v54 = vmul.f32 %v520_v24, %v520_v24  ;;  %v489_v12 = vmul.f32 1.442695, %v461_v33  ;;  %v431_v59 = vsub.f32 %v285_v41, %v413_v45 }
 0x188   :  { %v851_v2 = vpop.eup %850  ;;  %v681_v21 = vadd.f32 %v680_v15, %v679_v34  ;;  %v631_v20 = vmul.f32 %v535_v28, %v1373_v55  ;;  %v521_v51 = vmax.f32 %v505_v47, 0.0  ;;  %v462_v10 = vsub.f32 0.0, %v1429_v3 }
 0x189   :  { %v682_v6 = vsel %vm674_vm8, %v661_v19, 0.0  ;;  %v632_v27 = vmul.f32 %v536_v54, %v1375_v37  ;;  %v506_v42 = vsub.f32 1.0, %v851_v2  ;;  %856 = vpow2.f32 %v489_v12  ;;  %v864_v54 = vld [vmem:[%s1512_s1 + $0x60] sm:$0xff] }
 0x18a   :  { %v853_v44 = vpop.eup %852  ;;  %v683_v7 = vadd.f32 %v682_v6, %v681_v21  ;;  %v647_v61 = vmul.f32 %v631_v20, %v1318_v52  ;;  %v537_v50 = vmul.f32 %v521_v51, %v521_v51  ;;  %v1439_v1 = vmax.f32 %v431_v59, 0.0 }
 0x18b   :  { %v648_v15 = vmul.f32 %v632_v27, %v1335_v49  ;;  %v522_v55 = vmax.f32 %v506_v42, 0.0  ;;  %v507_v11 = vsub.f32 1.0, %v853_v44  ;;  %v491_v13 = vmul.f32 1.442695, %v462_v10 }
 0x18c   :  { %v685_v30 = vadd.f32 %v684_v18, %v683_v7  ;;  %v663_v37 = vmul.f32 %v1326_v4, %v647_v61  ;;  %v633_v9 = vmul.f32 %v537_v50, %v1387_v60  ;;  %v463_v36 = vsub.f32 0.0, %v1439_v1  ;;  %v865_v50 = vld [vmem:[%s1512_s1 + $0x68] sm:$0xff] }
 0x18d   :  { %v855_v35 = vpop.eup %854  ;;  %v664_v23 = vmul.f32 %v1340_v0, %v648_v15  ;;  %v538_v29 = vmul.f32 %v522_v55, %v522_v55  ;;  %v523_v52 = vmax.f32 %v507_v11, 0.0  ;;  %858 = vpow2.f32 %v491_v13 }
 0x18e   :  { %v686_v38 = vsel %vm674_vm8, %v663_v37, 0.0  ;;  %v649_v49 = vmul.f32 %v633_v9, %v1350_v25  ;;  %v508_v58 = vsub.f32 1.0, %v855_v35  ;;  %v493_v53 = vmul.f32 1.442695, %v463_v36 }
 0x18f   :  { %v687_v62 = vadd.f32 %v686_v38, %v685_v30  ;;  %v688_v40 = vsel %vm674_vm8, %v664_v23, 0.0  ;;  %v634_v4 = vmul.f32 %v538_v29, %v1394_v57  ;;  %v539_v60 = vmul.f32 %v523_v52, %v523_v52 }
 0x190   :  { %v665_v33 = vmul.f32 %v1359_v48, %v649_v49  ;;  %v524_v0 = vmax.f32 %v508_v58, 0.0  ;;  %v286_v14 = vadd.f32 %v1406_v63, %v1141_v8  ;;  %v1518_v43 = vmov 0.0  }
 0x191   :  { %v756_v25 = vsel %vm587_vm9, 1.0, %v1518_v43  ;;  %v689_v32 = vadd.f32 %v688_v40, %v687_v62  ;;  %v650_v24 = vmul.f32 %v634_v4, %v1286_v17  ;;  %v635_v41 = vmul.f32 %v539_v60, %v1396_v31 }
 0x192   :  { %v690_v57 = vsel %vm674_vm8, %v665_v33, 0.0  ;;  %v540_v45 = vmul.f32 %v524_v0, %v524_v0  ;;  %860 = vpow2.f32 %v493_v53  ;;  %v432_v34 = vsub.f32 %v286_v14, %v416_v16  ;;  %v867_v14 = vld [vmem:[%s1512_s1 + $0x78] sm:$0xff] }
 0x193   :  { %v857_v48 = vpop.eup %856  ;;  %v1519_v18 = vmov 0.75   ;;  %v691_v8 = vadd.f32 %v690_v57, %v689_v32  ;;  %v666_v63 = vmul.f32 %v1292_v26, %v650_v24  ;;  %v651_v46 = vmul.f32 %v635_v41, %v1364_v5 }
 0x194   :  { %v572_v28 = vsel %vm556_vm10, 0.25, %v1519_v18  ;;  %v636_v47 = vmul.f32 %v540_v45, %v1404_v56  ;;  %v509_v17 = vsub.f32 1.0, %v857_v48  ;;  %v448_v19 = vmax.f32 %v432_v34, 0.0 }
 0x195   :  { %v757_v31 = vsel %vm588_vm11, 1.0, %v1518_v43  ;;  %vm557_vm12 = vcmp.eq.s32.totalorder %v864_v54, 1  ;;  %v692_v12 = vsel %vm674_vm8, %v666_v63, 0.0  ;;  %v667_v2 = vmul.f32 %v756_v25, %v651_v46 }
 0x196   :  { %v693_v21 = vadd.f32 %v692_v12, %v691_v8  ;;  %v652_v26 = vmul.f32 %v636_v47, %v572_v28  ;;  %v525_v20 = vmax.f32 %v509_v17, 0.0  ;;  %v464_v5 = vsub.f32 0.0, %v448_v19  ;;  %v673_v12 = vld [vmem:[#allocation2] sm:$0x1] }
 0x197   :  { %vm589_vm13 = vcmp.ge.s32.totalorder %v864_v54, 0  ;;  %v694_v56 = vsel %vm674_vm8, %v667_v2, 0.0  ;;  %v859_v51 = vpop.eup %858  ;;  %v573_v42 = vsel %vm557_vm12, 0.25, %v1519_v18  ;;  %vm558_vm14 = vcmp.eq.s32.totalorder %v865_v50, 1 }
 0x198   :  { %v695_v59 = vadd.f32 %v694_v56, %v693_v21  ;;  %v668_v6 = vmul.f32 %v757_v31, %v652_v26  ;;  %v541_v39 = vmul.f32 %v525_v20, %v525_v20  ;;  %v495_v27 = vmul.f32 1.442695, %v464_v5 }
 0x199   :  { %v510_v44 = vsub.f32 1.0, %v859_v51  ;;  %v758_v10 = vsel %vm589_vm13, 1.0, %v1518_v43  ;;  %vm590_vm15 = vcmp.ge.s32.totalorder %v865_v50, 0  ;;  %v574_v13 = vsel %vm558_vm14, 0.25, %v1519_v18 }
 0x19a   :  { %v696_v7 = vsel %vm674_vm8, %v668_v6, 0.0  ;;  %v637_v61 = vmul.f32 %v541_v39, %v1417_v22  ;;  %862 = vpow2.f32 %v495_v27  ;;  %v866_v22 = vld [vmem:[%s1512_s1 + $0x70] sm:$0xff]  ;;  %v759_v52 = vsel %vm590_vm15, 1.0, %v1518_v43  ;;  %s895_s1 = smov [#allocation3]  }
 0x19b   :  { %v697_v15 = vadd.f32 %v696_v7, %v695_v59  ;;  %v526_v55 = vmax.f32 %v510_v44, 0.0  ;;  %vm559_vm1 = vcmp.eq.s32.totalorder %v866_v22, 1  ;;  %vm591_vm0 = vcmp.ge.s32.totalorder %v866_v22, 0  ;;  %s726_s23 = sshll.u32 %s895_s1, 4  ;;  %s727_s23 = int_to_ptr.vmem [resolvable:$true] %s726_s23 }
 0x19c   :  { %v861_v11 = vpop.eup %860  ;;  %v653_v30 = vmul.f32 %v637_v61, %v573_v42  ;;  %v575_v62 = vsel %vm559_vm1, 0.25, %v1519_v18  ;;  %vm560_vm3 = vcmp.eq.s32.totalorder %v867_v14, 1  ;;  %vm592_vm4 = vcmp.ge.s32.totalorder %v867_v14, 0  ;;  %s868_s24 = scalar_lea.vmem %s727_s23, 16  ;;  %s872_s25 = scalar_lea.vmem %s727_s23, 32 }
 0x19d   :  { %v542_v37 = vmul.f32 %v526_v55, %v526_v55  ;;  %v511_v9 = vsub.f32 1.0, %v861_v11  ;;  %v576_v41 = vsel %vm560_vm3, 0.25, %v1519_v18  ;;  %v761_v57 = vsel %vm592_vm4, 1.0, %v1518_v43  ;;  %p869_p0 = scmp.ne.s32.totalorder %s727_s23, %s868_s24  ;;  %p873_p1 = scmp.lt.s32.totalorder %s727_s23, %s727_s23 }
 0x19e   :  { %v669_v35 = vmul.f32 %v758_v10, %v653_v30  ;;  %p874_p2 = scmp.lt.s32.totalorder %s872_s25, %s868_s24 }
 0x19f   :  { %v638_v23 = vmul.f32 %v542_v37, %v1429_v3  ;;  %v527_v29 = vmax.f32 %v511_v9, 0.0  ;;  %v760_v3 = vsel %vm591_vm0, 1.0, %v1518_v43 }
 0x1a0   :  { %v698_v36 = vsel %vm674_vm8, %v669_v35, 0.0  ;;  %p875_p3 = por %p874_p2, %p873_p1 }
 0x1a1   :  { %v699_v38 = vadd.f32 %v698_v36, %v697_v15  ;;  %v654_v49 = vmul.f32 %v638_v23, %v574_v13  ;;  %v543_v58 = vmul.f32 %v527_v29, %v527_v29 }
 0x1a2   :  { %p876_p4 = pnand %p875_p3, %p869_p0 }
 0x1a3   :  { %v670_v40 = vmul.f32 %v759_v52, %v654_v49  ;;  %v639_v4 = vmul.f32 %v543_v58, %v1439_v1 }
 0x1a4   :  { %v863_v60 = vpop.eup %862 }
 0x1a5   :  { %v700_v16 = vsel %vm674_vm8, %v670_v40, 0.0  ;;  %v655_v33 = vmul.f32 %v639_v4, %v575_v62  ;;  %v512_v0 = vsub.f32 1.0, %v863_v60 }
 0x1a6   :  { %v701_v53 = vadd.f32 %v700_v16, %v699_v38 }
 0x1a7   :  { %v528_v25 = vmax.f32 %v512_v0, 0.0  ;;  %v671_v32 = vmul.f32 %v760_v3, %v655_v33 }
 0x1a9   :  { %v544_v24 = vmul.f32 %v528_v25, %v528_v25  ;;  %v702_v45 = vsel %vm674_vm8, %v671_v32, 0.0 }
 0x1aa   :  { %v703_v48 = vadd.f32 %v702_v45, %v701_v53 }
 0x1ab   :  { %v640_v1 = vmul.f32 %v544_v24, %v448_v19 }
 0x1ad   :  { %v656_v34 = vmul.f32 %v640_v1, %v576_v41 }
 0x1af   :  { %v672_v28 = vmul.f32 %v761_v57, %v656_v34 }
 0x1b1   :  { %v704_v8 = vsel %vm674_vm8, %v672_v28, 0.0 }
 0x1b2   :  { %v705_v63 = vadd.f32 %v704_v8, %v703_v48 }
 0x1b4   :  { %v706_v46 = vrot.slane %v705_v63, 4 }
 0x1b6   :  { %v707_v47 = vadd.f32 %v706_v46, %v705_v63 }
 0x1b8   :  { %v708_v17 = vrot.slane %v707_v47, 2 }
 0x1ba   :  { %v709_v31 = vadd.f32 %v708_v17, %v707_v47 }
 0x1bc   :  { %v710_v54 = vrot.slane %v709_v31, 1 }
 0x1be   :  { %v711_v2 = vadd.f32 %v710_v54, %v709_v31 }
 0x1c0   :  { %v712_v21 = vadd.f32 %v711_v2, %v673_v12 }
 0x1c2   :  { %714 = vst.msk [vmem:[#allocation2] sm:$0x1] %vm60_vm2, %v712_v21 }
 0x1c9   :  { %v718_v43 = vld [vmem:[#allocation2] sm:$0x1] }
 0x1ca   :  { %719 = vst.msk [vmem:[#allocation3] sm:$0x1] %vm60_vm2, %v718_v43 }
 0x1cb   :  { %879 = shalt.err (!%p876_p4)
}
 0x1cc   :  { %s880_s28 = scalar_lea.hbm %s1513_s2, 16 }
 0x1cd   :  { %p881_p5 = scmp.ne.s32.totalorder %s1513_s2, %s880_s28  ;;  %p884_p6 = scmp.lt.u32.totalorder %s880_s28, %s1513_s2 }
 0x1cf   :  { %p886_p7 = pnand %p884_p6, %p881_p5 }
 0x1d1   :  { %889 = shalt.err (!%p886_p7)
}
 0x1d2   :  { %729 = dma.vmem_to_hbm [thread:$0]  %s727_s23, 16, %s1513_s2, [#allocation4]  }
 0x1d3   :  { %890 = dma.done.wait [#allocation4], 16  }
 0x1d4   :  { %891 = vsyncadd [#allocation4], 4294967280 }
 0x1d5   :  { %733 = vsyncpa [#allocation4], 1 }

</bundles_post_ra>
